<compile_context>
chip_gen: v7x
topology: tpu7x:2x2x1
jax: 0.10.0
libtpu: 0.0.40
codegen_flags: <defaults>
</compile_context>

<pallas_src>
import jax
import jax.numpy as jnp
from jax.experimental import pallas as pl
from jax.experimental.pallas import tpu as pltpu


def robertagger_kernel(x_ref, wt_ref, wr_ref, bias_ref, brep_ref, out_ref):
    # x_ref   : (TB, slen, hidden)   bf16  embedded tokens, TB batch elements
    # wt_ref  : (hidden, nl*nl)      bf16  label-tiled head weight / temperature
    # wr_ref  : (hidden, nl*nl)      bf16  label-repeated head weight / temperature
    # bias_ref: (slen-1, nl*nl)      f32   b/T + transition.T (+ start at t=0)
    # brep_ref: (1, nl*nl)           f32   label-repeated bias / temperature
    # out_ref : (TB, slen-1, nl*nl)  f32   lane-dense CRF pairwise scores
    tb, slen, hidden = x_ref.shape
    nl2 = out_ref.shape[-1]

    # One big matmul per grid step: (TB*slen, hidden) @ (hidden, nl*nl).
    x2 = x_ref[...].reshape(tb * slen, hidden)                          # bf16
    em_t = jnp.dot(x2, wt_ref[...], preferred_element_type=jnp.float32)
    em_r = jnp.dot(x2, wr_ref[...], preferred_element_type=jnp.float32)
    em_t = em_t.reshape(tb, slen, nl2)
    em_r = em_r.reshape(tb, slen, nl2)

    # scores[b, t, i*nl+j] = em[b,t,j] + b[j]/T + trans[j,i] + (start[j] @ t=0)
    scores = em_t[:, : slen - 1, :] + bias_ref[...][None, :, :]
    out_ref[...] = scores

    # scores[b, slen-2, i*nl+j] += em[b, slen-1, i]  — one row per batch elem.
    last_add = em_r[:, slen - 1, :] + brep_ref[...]                 # (TB, nl*nl)
    out_ref[:, pl.ds(slen - 2, 1), :] = (
        scores[:, slen - 2 : slen - 1, :] + last_add[:, None, :])


def _pick_block_batch(bsz, max_tb=8):
    # Largest divisor of bsz (capped) that still leaves >= 2 grid steps so the
    # batch axis can be sharded across v7x's two TensorCores.
    best = 1
    for tb in range(1, min(bsz // 2, max_tb) + 1):
        if bsz % tb == 0:
            best = tb
    return best


def robertagger_forward(x_emb, clf_w, clf_b, transition, start_transition,
                        temperature, block_batch=None):
    bsz, slen, hidden = x_emb.shape
    nl = transition.shape[0]
    nl2 = nl * nl
    tb = _pick_block_batch(bsz) if block_batch is None else block_batch
    assert bsz % tb == 0

    # ---- host-side (trace-time) parameter preprocessing -------------------
    inv_t = jnp.float32(1.0 / float(temperature))
    # Fold 1/temperature into the emission path only (NOT transition/start).
    w_eff = clf_w.astype(jnp.float32) * inv_t                    # (hidden, nl)
    b_eff = clf_b.astype(jnp.float32) * inv_t                    # (nl,)
    w_tiled = jnp.tile(w_eff, (1, nl)).astype(jnp.bfloat16)      # col i*nl+j = W[:, j]
    w_rep = jnp.repeat(w_eff, nl, axis=1).astype(jnp.bfloat16)   # col i*nl+j = W[:, i]
    trans_flat = transition.T.reshape(nl2)                       # [i*nl+j] = trans[j, i]
    base = jnp.tile(b_eff, nl) + trans_flat
    bias = jnp.broadcast_to(base, (slen - 1, nl2))
    bias = bias.at[0].add(jnp.tile(start_transition, nl))        # start only at t=0
    b_rep = jnp.repeat(b_eff, nl).reshape(1, nl2)
    x_bf = x_emb.astype(jnp.bfloat16)

    cost = pl.CostEstimate(
        flops=2 * 2 * bsz * slen * hidden * nl2,
        transcendentals=0,
        bytes_accessed=(x_bf.size * 2 + (w_tiled.size + w_rep.size) * 2
                        + (bias.size + b_rep.size) * 4
                        + bsz * (slen - 1) * nl2 * 4),
    )

    out_flat = pl.pallas_call(
        robertagger_kernel,
        out_shape=jax.ShapeDtypeStruct((bsz, slen - 1, nl2), jnp.float32),
        grid_spec=pltpu.PrefetchScalarGridSpec(
            num_scalar_prefetch=0,
            grid=(bsz // tb,),
            in_specs=[
                pl.BlockSpec((tb, slen, hidden), lambda b: (b, 0, 0)),
                pl.BlockSpec((hidden, nl2), lambda b: (0, 0)),
                pl.BlockSpec((hidden, nl2), lambda b: (0, 0)),
                pl.BlockSpec((slen - 1, nl2), lambda b: (0, 0)),
                pl.BlockSpec((1, nl2), lambda b: (0, 0)),
            ],
            out_specs=pl.BlockSpec((tb, slen - 1, nl2), lambda b: (b, 0, 0)),
        ),
        compiler_params=pltpu.CompilerParams(
            dimension_semantics=("parallel",)),
        cost_estimate=cost,
    )(x_bf, w_tiled, w_rep, bias, b_rep)

    # Free reshape back to the PyTorch-shaped output (bsz, slen-1, nl, nl).
    return out_flat.reshape(bsz, slen - 1, nl, nl)


def reference_forward(x_emb, clf_w, clf_b, transition, start_transition,
                      temperature):
    # Pure-JAX reference mirroring the PyTorch module line-by-line.
    em = (jnp.einsum("bsh,hn->bsn", x_emb, clf_w,
                     precision=jax.lax.Precision.HIGHEST) + clf_b) / temperature
    scores = em[:, :-1][:, :, None, :] + transition.T[None, None, :, :]
    scores = scores.at[:, 0].add(start_transition)
    scores = scores.at[:, -1].add(em[:, -1][:, :, None])
    return scores


if __name__ == "__main__":
    bsz, slen, hidden, n_labels, vocab = 4, 8, 32, 8, 64
    temperature = 2.0   # power of two => temperature folding is rounding-exact

    key = jax.random.PRNGKey(0)
    k_words, k_emb, k_w, k_b, k_start, k_trans = jax.random.split(key, 6)

    # inputs
    words = jax.random.randint(k_words, (bsz, slen), 0, vocab, dtype=jnp.int32)

    # "token_clf" parameters (embedding + linear head) — deterministic init
    emb_table = jax.random.normal(k_emb, (vocab, hidden), jnp.float32) * 0.05
    clf_w = jax.random.normal(k_w, (hidden, n_labels), jnp.float32) * 0.1
    clf_b = jax.random.normal(k_b, (n_labels,), jnp.float32) * 0.1

    # RoBERTagger parameters: nn.init.uniform_ -> U[0, 1)
    start_transition = jax.random.uniform(k_start, (n_labels,), jnp.float32)
    transition = jax.random.uniform(k_trans, (n_labels, n_labels), jnp.float32)

    # glue: embedding lookup (gather) in plain JAX (see TODO at top)
    x_emb = jnp.take(emb_table, words, axis=0)          # (bsz, slen, hidden)

    scores = robertagger_forward(x_emb, clf_w, clf_b, transition,
                                 start_transition, temperature)
    scores = jax.block_until_ready(scores)
    assert scores.shape == (bsz, slen - 1, n_labels, n_labels)

    # Tight check: feed the reference the same bf16-rounded x/W the kernel
    # consumes (isolates the kernel's score construction; the bf16 cast is the
    # only deviation from the all-f32 PyTorch math).
    x_q = x_emb.astype(jnp.bfloat16).astype(jnp.float32)
    w_q = clf_w.astype(jnp.bfloat16).astype(jnp.float32)
    ref_q = reference_forward(x_q, w_q, clf_b, transition, start_transition,
                              temperature)
    assert jnp.allclose(scores, ref_q, atol=1e-4, rtol=1e-4)

    # Loose sanity check against the unrounded f32 reference.
    ref = reference_forward(x_emb, clf_w, clf_b, transition, start_transition,
                            temperature)
    assert jnp.allclose(scores, ref, atol=1e-2, rtol=1e-2)

    print("KERNEL_OK")
</pallas_src>

<mosaic_0001>
module attributes {stable_mosaic.version = 11 : i64} {
  func.func @robertagger_kernel(%arg0: i32, %arg1: memref<2x8x32xbf16, #tpu.memory_space<vmem>>, %arg2: memref<32x64xbf16, #tpu.memory_space<vmem>>, %arg3: memref<32x64xbf16, #tpu.memory_space<vmem>>, %arg4: memref<7x64xf32, #tpu.memory_space<vmem>>, %arg5: memref<1x64xf32, #tpu.memory_space<vmem>>, %arg6: memref<2x7x64xf32, #tpu.memory_space<vmem>>) attributes {dimension_semantics = [#tpu.dimension_semantics<parallel>], iteration_bounds = array<i64: 2>, scalar_prefetch = 0 : i64, scratch_operands = 0 : i64, tpu.core_type = #tpu.core_type<tc>, window_params = [{transform_indices = @transform_0, window_bounds = array<i64: 2, 8, 32>}, {pipeline_mode = #tpu.pipeline_mode<synchronous>, transform_indices = @transform_1, window_bounds = array<i64: 32, 64>}, {pipeline_mode = #tpu.pipeline_mode<synchronous>, transform_indices = @transform_2, window_bounds = array<i64: 32, 64>}, {pipeline_mode = #tpu.pipeline_mode<synchronous>, transform_indices = @transform_3, window_bounds = array<i64: 7, 64>}, {pipeline_mode = #tpu.pipeline_mode<synchronous>, transform_indices = @transform_4, window_bounds = array<i64: 1, 64>}, {transform_indices = @transform_5, window_bounds = array<i64: 2, 7, 64>}]} {
    %c0 = arith.constant 0 : index
    %c0_0 = arith.constant 0 : index
    %c0_1 = arith.constant 0 : index
    %0 = vector.load %arg1[%c0, %c0_0, %c0_1] : memref<2x8x32xbf16, #tpu.memory_space<vmem>>, vector<2x8x32xbf16>
    %1 = vector.shape_cast %0 : vector<2x8x32xbf16> to vector<16x32xbf16>
    %c0_2 = arith.constant 0 : index
    %c0_3 = arith.constant 0 : index
    %2 = vector.load %arg2[%c0_2, %c0_3] : memref<32x64xbf16, #tpu.memory_space<vmem>>, vector<32x64xbf16>
    %cst = arith.constant dense<0.000000e+00> : vector<16x64xf32>
    %3 = tpu.matmul %1, %2, %cst {dimension_numbers = #tpu.dot_dimension_numbers<[1], [0], [0], [1], [0, 0, 1, 1], [], []>} : vector<16x32xbf16>, vector<32x64xbf16>, vector<16x64xf32> -> vector<16x64xf32>
    %c0_4 = arith.constant 0 : index
    %c0_5 = arith.constant 0 : index
    %4 = vector.load %arg3[%c0_4, %c0_5] : memref<32x64xbf16, #tpu.memory_space<vmem>>, vector<32x64xbf16>
    %cst_6 = arith.constant dense<0.000000e+00> : vector<16x64xf32>
    %5 = tpu.matmul %1, %4, %cst_6 {dimension_numbers = #tpu.dot_dimension_numbers<[1], [0], [0], [1], [0, 0, 1, 1], [], []>} : vector<16x32xbf16>, vector<32x64xbf16>, vector<16x64xf32> -> vector<16x64xf32>
    %6 = vector.shape_cast %3 : vector<16x64xf32> to vector<2x8x64xf32>
    %7 = vector.shape_cast %5 : vector<16x64xf32> to vector<2x8x64xf32>
    %8 = vector.extract_strided_slice %6 {offsets = [0, 0, 0], sizes = [2, 7, 64], strides = [1, 1, 1]} : vector<2x8x64xf32> to vector<2x7x64xf32>
    %c0_7 = arith.constant 0 : index
    %c0_8 = arith.constant 0 : index
    %9 = vector.load %arg4[%c0_7, %c0_8] : memref<7x64xf32, #tpu.memory_space<vmem>>, vector<7x64xf32>
    %10 = vector.shape_cast %9 : vector<7x64xf32> to vector<1x7x64xf32>
    %11 = vector.broadcast %10 : vector<1x7x64xf32> to vector<2x7x64xf32>
    %12 = arith.addf %8, %11 : vector<2x7x64xf32>
    %c0_9 = arith.constant 0 : index
    %c0_10 = arith.constant 0 : index
    %c0_11 = arith.constant 0 : index
    %13 = vector.load %arg6[%c0_9, %c0_10, %c0_11] : memref<2x7x64xf32, #tpu.memory_space<vmem>>, vector<2x7x64xf32>
    tpu.vector_store %arg6[%c0_9, %c0_10, %c0_11], %12 {strides = array<i32>} : memref<2x7x64xf32, #tpu.memory_space<vmem>>, vector<2x7x64xf32>,
    %14 = vector.extract_strided_slice %7 {offsets = [0, 7, 0], sizes = [2, 1, 64], strides = [1, 1, 1]} : vector<2x8x64xf32> to vector<2x1x64xf32>
    %15 = vector.shape_cast %14 : vector<2x1x64xf32> to vector<2x64xf32>
    %c0_12 = arith.constant 0 : index
    %c0_13 = arith.constant 0 : index
    %16 = vector.load %arg5[%c0_12, %c0_13] : memref<1x64xf32, #tpu.memory_space<vmem>>, vector<1x64xf32>
    %17 = vector.broadcast %16 : vector<1x64xf32> to vector<2x64xf32>
    %18 = arith.addf %15, %17 : vector<2x64xf32>
    %19 = vector.extract_strided_slice %12 {offsets = [0, 6, 0], sizes = [2, 1, 64], strides = [1, 1, 1]} : vector<2x7x64xf32> to vector<2x1x64xf32>
    %20 = vector.shape_cast %18 : vector<2x64xf32> to vector<2x1x64xf32>
    %21 = arith.addf %19, %20 : vector<2x1x64xf32>
    %c0_14 = arith.constant 0 : index
    %c6 = arith.constant 6 : index
    %c0_15 = arith.constant 0 : index
    %22 = vector.load %arg6[%c0_14, %c6, %c0_15] : memref<2x7x64xf32, #tpu.memory_space<vmem>>, vector<2x1x64xf32>
    tpu.vector_store %arg6[%c0_14, %c6, %c0_15], %21 {strides = array<i32>} : memref<2x7x64xf32, #tpu.memory_space<vmem>>, vector<2x1x64xf32>,
    return
  }
  func.func @transform_0(%arg0: i32) -> (i32, i32, i32) {
    %c0_i32 = arith.constant 0 : i32
    %c0_i32_0 = arith.constant 0 : i32
    %c0_i32_1 = arith.constant 0 : i32
    return %arg0, %c0_i32, %c0_i32_0 : i32, i32, i32
  }
  func.func @transform_1(%arg0: i32) -> (i32, i32) {
    %c0_i32 = arith.constant 0 : i32
    %c0_i32_0 = arith.constant 0 : i32
    %c0_i32_1 = arith.constant 0 : i32
    return %c0_i32, %c0_i32_0 : i32, i32
  }
  func.func @transform_2(%arg0: i32) -> (i32, i32) {
    %c0_i32 = arith.constant 0 : i32
    %c0_i32_0 = arith.constant 0 : i32
    %c0_i32_1 = arith.constant 0 : i32
    return %c0_i32, %c0_i32_0 : i32, i32
  }
  func.func @transform_3(%arg0: i32) -> (i32, i32) {
    %c0_i32 = arith.constant 0 : i32
    %c0_i32_0 = arith.constant 0 : i32
    %c0_i32_1 = arith.constant 0 : i32
    return %c0_i32, %c0_i32_0 : i32, i32
  }
  func.func @transform_4(%arg0: i32) -> (i32, i32) {
    %c0_i32 = arith.constant 0 : i32
    %c0_i32_0 = arith.constant 0 : i32
    %c0_i32_1 = arith.constant 0 : i32
    return %c0_i32, %c0_i32_0 : i32, i32
  }
  func.func @transform_5(%arg0: i32) -> (i32, i32, i32) {
    %c0_i32 = arith.constant 0 : i32
    %c0_i32_0 = arith.constant 0 : i32
    %c0_i32_1 = arith.constant 0 : i32
    return %arg0, %c0_i32, %c0_i32_0 : i32, i32, i32
  }
}

</mosaic_0001>

<bundles_post_ra>
// kernel: tpu_custom_call.1
= control target key start
LH: loop header
LB: loop body
LE: loop exit
PB: predicated region body
PF: predicated region fallthrough
CT: control target
= control target key end

     0   :  { %10 = vsyncpa [#allocation3], 0  ;;  %s987_s0 = inlined_call_operand.hbm [shape: bf16[4,8,32], index: 0, kind: input, shape index: {}]   ;;  %s988_s1 = inlined_call_operand.hbm [shape: bf16[32,64], index: 1, kind: input, shape index: {}]   ;;  %s989_s2 = inlined_call_operand.hbm [shape: bf16[32,64], index: 2, kind: input, shape index: {}]   ;;  %s990_s3 = inlined_call_operand.vmem [shape: f32[7,64], index: 3, kind: input, shape index: {}]   ;;  %s991_s4 = inlined_call_operand.vmem [shape: f32[1,64], index: 4, kind: input, shape index: {}]   ;;  %s992_s5 = inlined_call_operand.vmem [shape: f32[4,7,64], index: 5, kind: output, shape index: {}]  }
   0x1   :  { %12 = vsyncpa [#allocation3 + $0x1], 0 }
   0x2   :  { %13 = vsyncpa [#allocation5], 0  ;;  %s794_s18 = smov 0   ;;  %s796_s19 = smov 0  }
   0x3   :  { %s798_s20 = smov 0   ;;  %s800_s21 = smov 0  }
   0x4 LB: > { %s514_s22 = sadd.s32 4294967295, %s755_s21   ;;  %p39_p0 = scmp.ne.s32.totalorder %s747_s19, %s743_s18  ;;  %s755_s21 = sphi %s800_s21, %s1008_s21   ;;  %s751_s20 = sphi %s798_s20, %s1007_s20   ;;  %s747_s19 = sphi %s796_s19, %s1006_s19   ;;  %s743_s18 = sphi %s794_s18, %s1005_s18  }
   0x5   : > { %p816_p1 = scmp.eq.s32.totalorder %s514_s22, 0  ;;  %p516_p2 = scmp.ge.s32.totalorder %s755_s21, 1 }
   0x6   : > { %p160_p3 = scmp.lt.s32.totalorder %s755_s21, 3  ;;  %s757_s26 = smov [#allocation4]  }
   0x7   : > { %s997_s23 = scalar_select %p816_p1, 1, 0 }
   0x8   : > { %p824_p4 = por %p816_p1, %p39_p0  ;;  %p828_p5 = pnand %p516_p2, %p160_p3 }
   0x9   : > { %s172_s27 = sshll.u32 %s757_s26, 4  ;;  %s758_s29 = smov [#allocation6]   ;;  %s173_s27 = int_to_ptr.vmem [resolvable:$true] %s172_s27 }
   0xa   : > { %s998_s24 = scalar_select %p824_p4, 1, 0 }
   0xb   : > { %s999_s25 = scalar_select %p828_p5, 1, 0 }
   0xc   : > { %p572_p6 = pneg %p828_p5  ;;  %s185_s30 = sshll.u32 %s758_s29, 4  ;;  %s840_s30 = int_to_ptr.vmem [resolvable:$true] %s185_s30 }
   0xd   : > { %s631_s8 = scalar_lea.hbm %s988_s1, 256 }
   0xe   : > { %p836_p7 = pnand %p572_p6, %p816_p1  ;;  %p632_p8 = scmp.ne.s32.totalorder %s988_s1, %s631_s8 }
   0xf   : > { %p638_p12 = scmp.lt.u32.totalorder %s631_s8, %s988_s1 }
  0x10   : > { %p633_p9 = pneg %p836_p7 }
  0x12   : > { %p634_p10 = pnand %p633_p9, %p632_p8 }
  0x14   : > { %p635_p11 = pneg %p634_p10 }
  0x16   : > { %p640_p13 = pnand %p638_p12, %p635_p11 }
  0x18   : > { %643 = shalt.err (!%p640_p13)
}
  0x19   : > { %s644_s13 = scalar_lea.vmem %s173_s27, 256  ;;  %p652_p6 = scmp.lt.s32.totalorder %s173_s27, %s173_s27 }
  0x1a   : > { %p645_p0 = scmp.ne.s32.totalorder %s173_s27, %s644_s13  ;;  %p653_p1 = scmp.lt.s32.totalorder %s644_s13, %s644_s13 }
  0x1c   : > { %p647_p2 = pnand %p645_p0, %p633_p9  ;;  %p654_p4 = por %p653_p1, %p652_p6 }
  0x1e   : > { %p648_p3 = pneg %p647_p2 }
  0x20   : > { %p655_p5 = pnand %p654_p4, %p648_p3 }
  0x22   : > { %658 = shalt.err (!%p655_p5)
}
  0x23   : > { %s759_s14 = smov 64   ;;  %s760_s15 = smov 4  }
  0x24   : > { %575 = dma.hbm_to_vmem [thread:$0]  (!%p836_p7), %s988_s1, 256, %s173_s27, [#allocation5], %s759_s14, %s759_s14, %s760_s15  }
  0x25   : > { %s659_s29 = scalar_lea.hbm %s989_s2, 256 }
  0x26   : > { %p660_p1 = scmp.ne.s32.totalorder %s989_s2, %s659_s29  ;;  %p666_p8 = scmp.lt.u32.totalorder %s659_s29, %s989_s2 }
  0x28   : > { %p662_p4 = pnand %p660_p1, %p633_p9 }
  0x2a   : > { %p663_p5 = pneg %p662_p4 }
  0x2c   : > { %p668_p10 = pnand %p666_p8, %p663_p5 }
  0x2e   : > { %671 = shalt.err (!%p668_p10)
}
  0x2f   : > { %s672_s27 = scalar_lea.vmem %s840_s30, 256  ;;  %p680_p0 = scmp.lt.s32.totalorder %s840_s30, %s840_s30 }
  0x30   : > { %p673_p11 = scmp.ne.s32.totalorder %s840_s30, %s672_s27  ;;  %p681_p2 = scmp.lt.s32.totalorder %s672_s27, %s672_s27 }
  0x32   : > { %p675_p12 = pnand %p673_p11, %p633_p9  ;;  %p682_p3 = por %p681_p2, %p680_p0 }
  0x34   : > { %p676_p13 = pneg %p675_p12 }
  0x36   : > { %p683_p6 = pnand %p682_p3, %p676_p13 }
  0x38   : > { %686 = shalt.err (!%p683_p6)
}
  0x39   : > { %578 = dma.hbm_to_vmem [thread:$0]  (!%p836_p7), %s989_s2, 256, %s840_s30, [#allocation5], %s759_s14, %s759_s14, %s760_s15  }
  0x3a   : > { %s896_s12 = sadd.s32 1, %s755_s21   ;;  %s26_s28 = sadd.s32 1, %s751_s20 }
  0x3b   : > { %s23_s13 = ssub.s32 %s755_s21, %s896_s12  ;;  %p33_p9 = scmp.ne.s32.totalorder %s751_s20, %s747_s19 }
  0x3c   : > { %p24_p1 = scmp.eq.s32.totalorder %s23_s13, 0  ;;  %p34_p4 = scmp.eq.s32.totalorder %s755_s21, 0 }
  0x3d   : > { %p585_p5 = scmp.lt.s32.totalorder %s755_s21, 2  ;;  %s205_s16 = sand.u32 1, %s751_s20  }
  0x3e   : > { %s907_s17 = scalar_select %p24_p1, %s751_s20, %s26_s28  }
  0x3f   : > { %p35_p8 = por %p34_p4, %p33_p9  ;;  %s520_s18 = sshll.u32 %s205_s16, 3 }
  0x40   : > { %s539_s26 = sshll.u32 %s755_s21, 7  ;;  %s209_s30 = scalar_lea.vmem [#allocation2], %s520_s18 }
  0x41   : > { %s913_s7 = scalar_lea.hbm %s987_s0, %s539_s26  ;;  %s216_s8 = sshll.u32 %s209_s30, 4  ;;  %s919_s8 = int_to_ptr.vmem [resolvable:$true] %s216_s8 }
  0x42   : > { %p915_p7 = pnand %p585_p5, %p35_p8  ;;  %s921_s27 = scalar_lea.sflag [#allocation3], %s205_s16 }
  0x43   : > { %s687_s10 = scalar_lea.hbm %s913_s7, 128  ;;  %s692_s13 = scalar_lea.hbm %s987_s0, 256 }
  0x44   : > { %p688_p10 = scmp.ne.s32.totalorder %s913_s7, %s687_s10  ;;  %p689_p11 = pneg %p915_p7 }
  0x45   : > { %p693_p0 = scmp.lt.u32.totalorder %s913_s7, %s987_s0  ;;  %p694_p2 = scmp.lt.u32.totalorder %s692_s13, %s687_s10 }
  0x46   : > { %p690_p12 = pnand %p689_p11, %p688_p10  ;;  %p696_p6 = scmp.lt.u32.totalorder %s687_s10, %s913_s7 }
  0x47   : > { %p695_p3 = por %p694_p2, %p693_p0 }
  0x48   : > { %p691_p13 = pneg %p690_p12 }
  0x49   : > { %p697_p9 = por %p696_p6, %p695_p3 }
  0x4b   : > { %p698_p1 = pnand %p697_p9, %p691_p13 }
  0x4d   : > { %701 = shalt.err (!%p698_p1)
}
  0x4e   : > { %s702_s16 = scalar_lea.vmem %s919_s8, 128  ;;  %s761_s29 = smov [#allocation2]  }
  0x4f   : > { %p703_p4 = scmp.ne.s32.totalorder %s919_s8, %s702_s16  ;;  %s707_s6 = sshll.u32 %s761_s29, 4  ;;  %s708_s6 = int_to_ptr.vmem [resolvable:$false] %s707_s6 }
  0x50   : > { %s709_s30 = scalar_lea.vmem %s708_s6, 256  ;;  %p710_p10 = scmp.lt.s32.totalorder %s919_s8, %s708_s6 }
  0x51   : > { %p705_p5 = pnand %p703_p4, %p689_p11  ;;  %p711_p12 = scmp.lt.s32.totalorder %s709_s30, %s702_s16 }
  0x53   : > { %p706_p8 = pneg %p705_p5  ;;  %p712_p0 = por %p711_p12, %p710_p10 }
  0x55   : > { %p713_p2 = pnand %p712_p0, %p706_p8 }
  0x57   : > { %716 = shalt.err (!%p713_p2)
}
  0x58   : > { %582 = dma.hbm_to_vmem [thread:$0]  (!%p915_p7), %s913_s7, 128, %s919_s8, %s921_s27, %s759_s14, %s759_s14, %s760_s15  }
  0x59   : > { %p1002_p11 = scmp.ne.s32.totalorder %s999_s25, 0 }
  0x5a   : > { %s230_s10 = sand.u32 (!%p1002_p11), 1, %s747_s19   ;;  %p1003_p13 = scmp.ne.s32.totalorder (!%p1002_p11), %s998_s24, 0 }
  0x5b   : > { %228 = sbr.rel (%p1002_p11) target bundleno = 333 (0x14d), region = 40  ;;  %s524_s11 = sshll.u32 (!%p1002_p11), %s230_s10, 3 }
  0x5c   : > { %s231_s28 = scalar_lea.sflag (!%p1002_p11), [#allocation3], %s230_s10  ;;  %s234_s13 = scalar_lea.vmem (!%p1002_p11), [#allocation2], %s524_s11 }
  0x62   : > { %734 = dma.done.wait (%p1003_p13), %s231_s28, 128  }
  0x63   : > { %736 = vsyncadd (%p1003_p13), %s231_s28, 4294967168  ;;  %p1004_p3 = scmp.ne.s32.totalorder %s997_s23, 0 }
  0x65   : > { %738 = dma.done.wait (%p1004_p3), [#allocation5], 512  }
  0x66   : > { %740 = vsyncadd (%p1004_p3), [#allocation5], 4294966784  ;;  %v762_v0 = vmov 0.0   ;;  %vm763_vm0 = vmmov 0   ;;  %v626_v1 = vld [vmem:[#allocation4] sm:$0xff]   ;;  %v627_v2 = vld [vmem:[#allocation6] sm:$0xff]  }
  0x67   : > { %546 = vmatprep.subr.bf16.mxu0 %v762_v0  ;;  %554 = vmatprep.subr.bf16.mxu1 %v762_v0  ;;  %v628_v3 = vld [vmem:[#allocation4 + $0x8] sm:$0xff]   ;;  %v629_v4 = vld [vmem:[#allocation6 + $0x8] sm:$0xff]   ;;  %vm300_vm1 = vcmask 261120   ;;  %s527_s23 = sshll.u32 %s514_s22, 1  ;;  %v402_v6 = vld [vmem:[%s990_s3] sm:$0x7f] }
  0x68   : > { %550 = vmatprep.mubr.msk.bf16.mxu0 %vm763_vm0, %v762_v0  ;;  %558 = vmatprep.mubr.msk.bf16.mxu1 %vm763_vm0, %v762_v0  ;;  %v630_v5 = vld [vmem:[%s234_s13] sm:$0xff]   ;;  %p271_p7 = scmp.lt.s32.totalorder %s527_s23, 3  ;;  %vm405_vm2 = vcmask 522240   ;;  %vm425_vm3 = vcmask 522246  }
  0x69   : > { %547 = vmatpush3.bf16.msra.mxu0 %v626_v1  ;;  %555 = vmatpush3.bf16.msra.mxu1 %v627_v2  ;;  %v536_v7 = vld [vmem:[%s991_s4] ss:$0 sm:$0xff] }
  0x6a   : > { %548 = vmatprep.subr.bf16.mxu0 %v762_v0  ;;  %556 = vmatprep.subr.bf16.mxu1 %v762_v0  ;;  %s1010_s23 = smov (!%p271_p7, %s527_s23), 3 }
  0x6b   : > { %s528_s24 = sshll.u32 %s1010_s23, 3 }
  0x6c   : > { %s274_s27 = scalar_lea.vmem %s992_s5, %s528_s24 }
  0x6d   : > { %549 = vmatpush3.bf16.msra.mxu0 %v628_v3  ;;  %557 = vmatpush3.bf16.msra.mxu1 %v629_v4 }
  0x70   : > { %551 = vmatmul.mubr.msk.bf16.vlgmr.msra.gmra.mrb[0].mxu0 %vm300_vm1, %v630_v5  ;;  %559 = vmatmul.mubr.msk.bf16.vlgmr.msra.gmra.mrb[0].mxu1 %vm300_vm1, %v630_v5 }
 0x143   : > { %v338_v8 = vpop.f32.mrb[0].mxu0  ;;  %v395_v10 = vpop.f32.mrb[0].mxu1 }
 0x144   : > { %v403_v9 = vadd.f32 %v402_v6, %v338_v8  ;;  %v552_v11 = vpop.f32.mrb[1].mxu0  ;;  %v415_v12 = vadd.f32 %v536_v7, %v395_v10  ;;  %v560_v13 = vpop.f32.mrb[1].mxu1 }
 0x145   : > { %v341_v14 = vpop.f32.mrb[2].mxu0  ;;  %v398_v16 = vpop.f32.mrb[2].mxu1 }
 0x146   : > { %406 = vst.msk [vmem:[%s274_s27] sm:$0x7f] %vm405_vm2, %v403_v9  ;;  %v404_v15 = vadd.f32 %v402_v6, %v341_v14  ;;  %v553_v17 = vpop.f32.mrb[3].mxu0  ;;  %v419_v18 = vrot.slane %v415_v12, 1  ;;  %v416_v19 = vadd.f32 %v536_v7, %v398_v16  ;;  %v561_v20 = vpop.f32.mrb[3].mxu1 }
 0x148   : > { %407 = vst.msk [vmem:[%s274_s27 + $0x8] sm:$0x7f] %vm405_vm2, %v404_v15  ;;  %v423_v21 = vadd.f32 %v419_v18, %v403_v9  ;;  %v420_v22 = vrot.slane %v416_v19, 1 }
 0x14a   : > { %426 = vst.msk [vmem:[%s274_s27] sm:$0x40] %vm425_vm3, %v423_v21  ;;  %v424_v23 = vadd.f32 %v420_v22, %v404_v15 }
 0x14c   : > { %427 = vst.msk [vmem:[%s274_s27 + $0x8] sm:$0x40] %vm425_vm3, %v424_v23 }
 0x14d PF: > { %p16_p6 = scmp.ge.s32.totalorder %s896_s12, 4   ;;  %s1005_s18 = smov %s747_s19 }
 0x14e   : > { %s1006_s19 = smov %s751_s20  ;;  %s1007_s20 = smov %s907_s17 }
 0x14f   : > { %s1008_s21 = smov %s896_s12  ;;  %18 = sbr.rel (!%p16_p6) target bundleno = 4 (0x4), region = 88 }
 0x156   :  { %450 = vsyncpa [#allocation3], 1 }
 0x157   :  { %452 = vsyncpa [#allocation3 + $0x1], 1 }
 0x158   :  { %453 = vsyncpa [#allocation5], 1 }

</bundles_post_ra>
